<compile_context>
chip_gen: v7x
topology: tpu7x:2x2x1
jax: 0.10.0
libtpu: 0.0.40
codegen_flags: <defaults>
</compile_context>

<pallas_src>
import functools
from math import pi

import jax
import jax.numpy as jnp
from jax.experimental import pallas as pl
from jax.experimental.pallas import tpu as pltpu


# ----------------------------- fused Pallas kernel -------------------------

def _fused_forward_kernel(
    a_ref, b_ref,                                   # SMEM (B,) scalars
    x_ref, n_ref, feat_ref,                         # per-batch VMEM blocks
    gmat_ref, gmatT_ref,
    t_w1_ref, t_b1_ref, t_w2_ref, t_b2_ref, tp_w_ref, tp_b_ref,
    in_w_ref, in_b_ref,
    gn1_g_ref, gn1_b_ref, c1_w_ref, c1_b_ref,
    gn2_g_ref, gn2_b_ref, c2_w_ref, c2_b_ref,
    out_w_ref, out_b_ref,
    sse_ref,
    pad_buf,                                        # VMEM scratch (Hmax, T+K-1) bf16
    *, K, groups, eps, T, Cin, H,
):
    # One grid step == one batch element; layout is (channels, time) so time
    # occupies the 128-lane axis.  Everything below stays in VMEM/vregs.
    b = pl.program_id(0)
    alpha = a_ref[b]                                # f32 scalars from SMEM
    beta = b_ref[b]

    x = x_ref[...]                                  # (Cin, T) f32
    n = n_ref[...]                                  # (Cin, T) f32

    # ---- v-diffusion mixing (f32 elementwise) ----
    x_noisy = alpha * x + beta * n
    v_target = alpha * n - beta * x

    pad_l = (K - 1) // 2
    pad_r = K - 1 - pad_l
    bf = pad_buf.dtype

    # Zero only the K-1 halo columns of the reusable padded scratch; the
    # interior is fully overwritten by each conv before it is read.
    pad_buf[:, 0:pad_l] = jnp.zeros((pad_buf.shape[0], pad_l), bf)
    pad_buf[:, pad_l + T:] = jnp.zeros((pad_buf.shape[0], pad_r), bf)

    def silu(y):
        # y * sigmoid(y), divide replaced by approx EUP reciprocal.
        return y * pl.reciprocal(1.0 + jnp.exp(-y), approx=True)

    def conv_same(h, ci, w_ref2, b_col):
        # 'same' cross-correlation Conv1d as one im2col matmul on the MXU:
        #   (Cout, K*ci) bf16  @  (K*ci, T) bf16  -> f32
        pad_buf[0:ci, pad_l:pad_l + T] = h.astype(bf)
        cols = jnp.concatenate(
            [pad_buf[0:ci, k:k + T] for k in range(K)], axis=0)       # (K*ci, T) bf16
        return jnp.dot(w_ref2[...], cols,
                       preferred_element_type=jnp.float32) + b_col

    gmat = gmat_ref[...]                            # (H, G) one-hot membership
    gmat_t = gmatT_ref[...]                         # (G, H)
    inv_cnt = 1.0 / float(T * (H // groups))

    def gn_silu(h, gamma_col, beta_col):
        # Single-pass GroupNorm (sum & sum-of-squares), group reduce/broadcast
        # via tiny one-hot matmuls, folded per-channel scale/shift, then SiLU.
        s1 = jnp.sum(h, axis=1, keepdims=True)                        # (H, 1)
        s2 = jnp.sum(h * h, axis=1, keepdims=True)                    # (H, 1)
        stats = jnp.concatenate([s1, s2], axis=1)                     # (H, 2)
        grp = jnp.dot(gmat_t, stats, preferred_element_type=jnp.float32)   # (G, 2)
        per_c = jnp.dot(gmat, grp, preferred_element_type=jnp.float32)     # (H, 2)
        mean = per_c[:, 0:1] * inv_cnt
        var = jnp.maximum(per_c[:, 1:2] * inv_cnt - mean * mean, 0.0)
        scale = jax.lax.rsqrt(var + eps) * gamma_col                  # (H, 1)
        shift = beta_col - mean * scale
        return silu(h * scale + shift)

    # ---- time-embedding MLP, column-oriented: result is an (H,1) bias ----
    t = jnp.dot(t_w1_ref[...], feat_ref[...].astype(bf),
                preferred_element_type=jnp.float32) + t_b1_ref[...]   # (TD, 1)
    t = silu(t)
    t = jnp.dot(t_w2_ref[...], t.astype(bf),
                preferred_element_type=jnp.float32) + t_b2_ref[...]   # (TD, 1)
    t_proj = jnp.dot(tp_w_ref[...], t.astype(bf),
                     preferred_element_type=jnp.float32) + tp_b_ref[...]
    t_proj = silu(t_proj)                                             # (H, 1)

    # ---- UNet1d-lite: in-conv -> time-conditioned resnet block -> 1x1 out ----
    h = conv_same(x_noisy, Cin, in_w_ref, in_b_ref[...])              # (H, T)
    r = gn_silu(h, gn1_g_ref[...], gn1_b_ref[...])
    r = conv_same(r, H, c1_w_ref, c1_b_ref[...]) + t_proj             # fused time-emb add
    r = gn_silu(r, gn2_g_ref[...], gn2_b_ref[...])
    r = conv_same(r, H, c2_w_ref, c2_b_ref[...])
    h = h + r                                                         # residual skip
    v_pred = jnp.dot(out_w_ref[...], h.astype(bf),
                     preferred_element_type=jnp.float32) + out_b_ref[...]   # (Cin, T)

    # ---- fused squared-error reduction: only this scalar reaches HBM ----
    diff = v_pred - v_target
    sse = jnp.sum(jnp.sum(diff * diff, axis=1, keepdims=True),
                  axis=0, keepdims=True)                              # (1, 1)
    sse_ref[...] = sse


# ------------------------------- wrapper / model ----------------------------

def fourier_features(sigmas, freqs):
    # LearnedPositionalEmbedding-style: cat([sigma, sin(2*pi*sigma*f), cos(...)], -1)
    x = sigmas[:, None]
    ang = 2.0 * pi * x * freqs[None, :]
    return jnp.concatenate([x, jnp.sin(ang), jnp.cos(ang)], axis=-1)


def model1d_forward(x, key, p, groups, kernel=3, eps=1e-5):
    """VDiffusion training forward: returns scalar MSE loss, like Model1d.forward."""
    B, Cin, T = x.shape
    H = p["in_w"].shape[-1]

    k_sig, k_noise = jax.random.split(key)
    sigmas = jax.random.uniform(k_sig, (B,), jnp.float32)       # UniformDistribution
    noise = jax.random.normal(k_noise, (B, Cin, T), jnp.float32)  # native NCT, no transpose
    angle = sigmas * (pi / 2)
    alphas = jnp.cos(angle)                                      # (B,) -> SMEM scalars
    betas = jnp.sin(angle)

    x_f32 = x.astype(jnp.float32)                                # stays NCT (C on sublanes, T on lanes)

    feat_col = fourier_features(sigmas, p["freqs"])[..., None]  # (B, F, 1)

    bf = jnp.bfloat16

    def conv_w(w):
        # (K, Ci, Co) -> (Co, K*Ci) im2col weight, pre-cast to bf16 (MXU operand).
        # NOTE: PyTorch Conv1d weights ((Co, Ci, K)) would need .permute(2,1,0) first.
        K_, Ci, Co = w.shape
        return jnp.transpose(w, (2, 0, 1)).reshape(Co, K_ * Ci).astype(bf)

    in_w2d = conv_w(p["in_w"])
    c1_w2d = conv_w(p["c1_w"])
    c2_w2d = conv_w(p["c2_w"])

    # time-MLP / out-proj weights in column orientation, bf16
    t_w1T = p["t_w1"].T.astype(bf)       # (TD, F)
    t_w2T = p["t_w2"].T.astype(bf)       # (TD, TD)
    tp_wT = p["tp_w"].T.astype(bf)       # (H, TD)
    out_wT = p["out_w"].T.astype(bf)     # (Cin, H)

    col = lambda v: v.reshape(-1, 1)     # f32 bias / affine columns

    # one-hot channel -> group membership for the in-kernel group reduce
    cg = H // groups
    gmat = (jnp.arange(H)[:, None] // cg
            == jnp.arange(groups)[None, :]).astype(jnp.float32)  # (H, G)
    gmat_t = gmat.T                                               # (G, H)

    inputs = [
        alphas, betas,
        x_f32, noise, feat_col,
        gmat, gmat_t,
        t_w1T, col(p["t_b1"]), t_w2T, col(p["t_b2"]), tp_wT, col(p["tp_b"]),
        in_w2d, col(p["in_b"]),
        col(p["gn1_g"]), col(p["gn1_b"]), c1_w2d, col(p["c1_b"]),
        col(p["gn2_g"]), col(p["gn2_b"]), c2_w2d, col(p["c2_b"]),
        out_wT, col(p["out_b"]),
    ]

    smem_spec = pl.BlockSpec(memory_space=pltpu.MemorySpace.SMEM)

    def per_batch(arr):
        return pl.BlockSpec((None,) + arr.shape[1:], lambda b: (b, 0, 0))

    def shared(arr):
        zeros = (0,) * arr.ndim
        return pl.BlockSpec(arr.shape, lambda b: zeros)

    in_specs = ([smem_spec, smem_spec]
                + [per_batch(a) for a in inputs[2:5]]
                + [shared(a) for a in inputs[5:]])

    sse = pl.pallas_call(
        functools.partial(_fused_forward_kernel, K=kernel, groups=groups, eps=eps,
                          T=T, Cin=Cin, H=H),
        grid=(B,),
        in_specs=in_specs,
        out_specs=pl.BlockSpec((None, 1, 1), lambda b: (b, 0, 0)),
        out_shape=jax.ShapeDtypeStruct((B, 1, 1), jnp.float32),
        scratch_shapes=[pltpu.VMEM((max(Cin, H), T + kernel - 1), jnp.bfloat16)],
        compiler_params=pltpu.CompilerParams(
            dimension_semantics=("parallel",),      # v7x: batch sharded over 2 TCs
            vmem_limit_bytes=32 * 1024 * 1024),
    )(*inputs)

    return jnp.sum(sse) / (B * Cin * T)


def init_params(key, in_channels, channels, time_dim, half_dim, kernel=3):
    ks = jax.random.split(key, 8)

    def nrm(k, shape, fan_in):
        return (jax.random.normal(k, shape, jnp.float32) /
                jnp.sqrt(jnp.float32(fan_in)))

    F = 2 * half_dim + 1
    z = lambda n: jnp.zeros((n,), jnp.float32)
    one = lambda n: jnp.ones((n,), jnp.float32)
    return {
        "freqs": jax.random.normal(ks[0], (half_dim,), jnp.float32),
        "t_w1": nrm(ks[1], (F, time_dim), F), "t_b1": z(time_dim),
        "t_w2": nrm(ks[2], (time_dim, time_dim), time_dim), "t_b2": z(time_dim),
        "in_w": nrm(ks[3], (kernel, in_channels, channels), kernel * in_channels),
        "in_b": z(channels),
        "gn1_g": one(channels), "gn1_b": z(channels),
        "c1_w": nrm(ks[4], (kernel, channels, channels), kernel * channels),
        "c1_b": z(channels),
        "tp_w": nrm(ks[5], (time_dim, channels), time_dim), "tp_b": z(channels),
        "gn2_g": one(channels), "gn2_b": z(channels),
        "c2_w": nrm(ks[6], (kernel, channels, channels), kernel * channels),
        "c2_b": z(channels),
        "out_w": nrm(ks[7], (channels, in_channels), channels),
        "out_b": z(in_channels),
    }


if __name__ == "__main__":
    key = jax.random.PRNGKey(0)
    k_x, k_p, k_fwd = jax.random.split(key, 3)

    B, C, T = 2, 2, 32          # (batch, in_channels, length) — NCT like PyTorch
    HIDDEN, TIME_DIM, HALF_DIM, GROUPS = 8, 16, 8, 4

    x = jax.random.normal(k_x, (B, C, T), jnp.float32)
    params = init_params(k_p, in_channels=C, channels=HIDDEN,
                         time_dim=TIME_DIM, half_dim=HALF_DIM)

    fwd = jax.jit(lambda x_, key_, p_: model1d_forward(x_, key_, p_, groups=GROUPS))
    loss = fwd(x, k_fwd, params)
    jax.block_until_ready(loss)
    print("KERNEL_OK")
</pallas_src>

<mosaic_0001>
module attributes {stable_mosaic.version = 11 : i64} {
  func.func @_fused_forward_kernel(%arg0: i32, %arg1: memref<2xf32, #tpu.memory_space<smem>>, %arg2: memref<2xf32, #tpu.memory_space<smem>>, %arg3: memref<1x2x32xf32, #tpu.memory_space<vmem>>, %arg4: memref<1x2x32xf32, #tpu.memory_space<vmem>>, %arg5: memref<1x17x1xf32, #tpu.memory_space<vmem>>, %arg6: memref<8x4xf32, #tpu.memory_space<vmem>>, %arg7: memref<4x8xf32, #tpu.memory_space<vmem>>, %arg8: memref<16x17xbf16, #tpu.memory_space<vmem>>, %arg9: memref<16x1xf32, #tpu.memory_space<vmem>>, %arg10: memref<16x16xbf16, #tpu.memory_space<vmem>>, %arg11: memref<16x1xf32, #tpu.memory_space<vmem>>, %arg12: memref<8x16xbf16, #tpu.memory_space<vmem>>, %arg13: memref<8x1xf32, #tpu.memory_space<vmem>>, %arg14: memref<8x6xbf16, #tpu.memory_space<vmem>>, %arg15: memref<8x1xf32, #tpu.memory_space<vmem>>, %arg16: memref<8x1xf32, #tpu.memory_space<vmem>>, %arg17: memref<8x1xf32, #tpu.memory_space<vmem>>, %arg18: memref<8x24xbf16, #tpu.memory_space<vmem>>, %arg19: memref<8x1xf32, #tpu.memory_space<vmem>>, %arg20: memref<8x1xf32, #tpu.memory_space<vmem>>, %arg21: memref<8x1xf32, #tpu.memory_space<vmem>>, %arg22: memref<8x24xbf16, #tpu.memory_space<vmem>>, %arg23: memref<8x1xf32, #tpu.memory_space<vmem>>, %arg24: memref<2x8xbf16, #tpu.memory_space<vmem>>, %arg25: memref<2x1xf32, #tpu.memory_space<vmem>>, %arg26: memref<1x1x1xf32, #tpu.memory_space<vmem>>, %arg27: memref<8x34xbf16, #tpu.memory_space<vmem>>) attributes {dimension_semantics = [#tpu.dimension_semantics<parallel>], iteration_bounds = array<i64: 2>, scalar_prefetch = 0 : i64, scratch_operands = 1 : i64, tpu.core_type = #tpu.core_type<tc>, window_params = [{transform_indices = @transform_0, window_bounds = array<i64: 2>}, {transform_indices = @transform_1, window_bounds = array<i64: 2>}, {transform_indices = @transform_2, window_bounds = array<i64: 1, 2, 32>}, {transform_indices = @transform_3, window_bounds = array<i64: 1, 2, 32>}, {transform_indices = @transform_4, window_bounds = array<i64: 1, 17, 1>}, {pipeline_mode = #tpu.pipeline_mode<synchronous>, transform_indices = @transform_5, window_bounds = array<i64: 8, 4>}, {pipeline_mode = #tpu.pipeline_mode<synchronous>, transform_indices = @transform_6, window_bounds = array<i64: 4, 8>}, {pipeline_mode = #tpu.pipeline_mode<synchronous>, transform_indices = @transform_7, window_bounds = array<i64: 16, 17>}, {pipeline_mode = #tpu.pipeline_mode<synchronous>, transform_indices = @transform_8, window_bounds = array<i64: 16, 1>}, {pipeline_mode = #tpu.pipeline_mode<synchronous>, transform_indices = @transform_9, window_bounds = array<i64: 16, 16>}, {pipeline_mode = #tpu.pipeline_mode<synchronous>, transform_indices = @transform_10, window_bounds = array<i64: 16, 1>}, {pipeline_mode = #tpu.pipeline_mode<synchronous>, transform_indices = @transform_11, window_bounds = array<i64: 8, 16>}, {pipeline_mode = #tpu.pipeline_mode<synchronous>, transform_indices = @transform_12, window_bounds = array<i64: 8, 1>}, {pipeline_mode = #tpu.pipeline_mode<synchronous>, transform_indices = @transform_13, window_bounds = array<i64: 8, 6>}, {pipeline_mode = #tpu.pipeline_mode<synchronous>, transform_indices = @transform_14, window_bounds = array<i64: 8, 1>}, {pipeline_mode = #tpu.pipeline_mode<synchronous>, transform_indices = @transform_15, window_bounds = array<i64: 8, 1>}, {pipeline_mode = #tpu.pipeline_mode<synchronous>, transform_indices = @transform_16, window_bounds = array<i64: 8, 1>}, {pipeline_mode = #tpu.pipeline_mode<synchronous>, transform_indices = @transform_17, window_bounds = array<i64: 8, 24>}, {pipeline_mode = #tpu.pipeline_mode<synchronous>, transform_indices = @transform_18, window_bounds = array<i64: 8, 1>}, {pipeline_mode = #tpu.pipeline_mode<synchronous>, transform_indices = @transform_19, window_bounds = array<i64: 8, 1>}, {pipeline_mode = #tpu.pipeline_mode<synchronous>, transform_indices = @transform_20, window_bounds = array<i64: 8, 1>}, {pipeline_mode = #tpu.pipeline_mode<synchronous>, transform_indices = @transform_21, window_bounds = array<i64: 8, 24>}, {pipeline_mode = #tpu.pipeline_mode<synchronous>, transform_indices = @transform_22, window_bounds = array<i64: 8, 1>}, {pipeline_mode = #tpu.pipeline_mode<synchronous>, transform_indices = @transform_23, window_bounds = array<i64: 2, 8>}, {pipeline_mode = #tpu.pipeline_mode<synchronous>, transform_indices = @transform_24, window_bounds = array<i64: 2, 1>}, {transform_indices = @transform_25, window_bounds = array<i64: 1, 1, 1>}]} {
    %0 = arith.index_cast %arg0 : i32 to index
    %1 = memref.load %arg1[%0] : memref<2xf32, #tpu.memory_space<smem>>
    %2 = arith.index_cast %arg0 : i32 to index
    %3 = memref.load %arg2[%2] : memref<2xf32, #tpu.memory_space<smem>>
    %c0 = arith.constant 0 : index
    %c0_0 = arith.constant 0 : index
    %c0_1 = arith.constant 0 : index
    %4 = vector.load %arg3[%c0, %c0_0, %c0_1] : memref<1x2x32xf32, #tpu.memory_space<vmem>>, vector<1x2x32xf32>
    %5 = vector.shape_cast %4 : vector<1x2x32xf32> to vector<2x32xf32>
    %c0_2 = arith.constant 0 : index
    %c0_3 = arith.constant 0 : index
    %c0_4 = arith.constant 0 : index
    %6 = vector.load %arg4[%c0_2, %c0_3, %c0_4] : memref<1x2x32xf32, #tpu.memory_space<vmem>>, vector<1x2x32xf32>
    %7 = vector.shape_cast %6 : vector<1x2x32xf32> to vector<2x32xf32>
    %8 = vector.broadcast %1 : f32 to vector<2x32xf32>
    %9 = arith.mulf %8, %5 : vector<2x32xf32>
    %10 = vector.broadcast %3 : f32 to vector<2x32xf32>
    %11 = arith.mulf %10, %7 : vector<2x32xf32>
    %12 = arith.addf %9, %11 : vector<2x32xf32>
    %13 = vector.broadcast %1 : f32 to vector<2x32xf32>
    %14 = arith.mulf %13, %7 : vector<2x32xf32>
    %15 = vector.broadcast %3 : f32 to vector<2x32xf32>
    %16 = arith.mulf %15, %5 : vector<2x32xf32>
    %17 = arith.subf %14, %16 : vector<2x32xf32>
    %cst = arith.constant 0.000000e+00 : bf16
    %18 = vector.broadcast %cst : bf16 to vector<8x1xbf16>
    %c0_5 = arith.constant 0 : index
    %c0_6 = arith.constant 0 : index
    %19 = vector.load %arg27[%c0_5, %c0_6] : memref<8x34xbf16, #tpu.memory_space<vmem>>, vector<8x1xbf16>
    tpu.vector_store %arg27[%c0_5, %c0_6], %18 {strides = array<i32>} : memref<8x34xbf16, #tpu.memory_space<vmem>>, vector<8x1xbf16>,
    %cst_7 = arith.constant 0.000000e+00 : bf16
    %20 = vector.broadcast %cst_7 : bf16 to vector<8x1xbf16>
    %c0_8 = arith.constant 0 : index
    %c33 = arith.constant 33 : index
    %21 = vector.load %arg27[%c0_8, %c33] : memref<8x34xbf16, #tpu.memory_space<vmem>>, vector<8x1xbf16>
    tpu.vector_store %arg27[%c0_8, %c33], %20 {strides = array<i32>} : memref<8x34xbf16, #tpu.memory_space<vmem>>, vector<8x1xbf16>,
    %c0_9 = arith.constant 0 : index
    %c0_10 = arith.constant 0 : index
    %22 = vector.load %arg6[%c0_9, %c0_10] : memref<8x4xf32, #tpu.memory_space<vmem>>, vector<8x4xf32>
    %c0_11 = arith.constant 0 : index
    %c0_12 = arith.constant 0 : index
    %23 = vector.load %arg7[%c0_11, %c0_12] : memref<4x8xf32, #tpu.memory_space<vmem>>, vector<4x8xf32>
    %c0_13 = arith.constant 0 : index
    %c0_14 = arith.constant 0 : index
    %24 = vector.load %arg8[%c0_13, %c0_14] : memref<16x17xbf16, #tpu.memory_space<vmem>>, vector<16x17xbf16>
    %c0_15 = arith.constant 0 : index
    %c0_16 = arith.constant 0 : index
    %c0_17 = arith.constant 0 : index
    %25 = vector.load %arg5[%c0_15, %c0_16, %c0_17] : memref<1x17x1xf32, #tpu.memory_space<vmem>>, vector<1x17x1xf32>
    %26 = vector.shape_cast %25 : vector<1x17x1xf32> to vector<17x1xf32>
    %27 = arith.truncf %26 : vector<17x1xf32> to vector<17x1xbf16>
    %cst_18 = arith.constant dense<0.000000e+00> : vector<16x1xf32>
    %28 = tpu.matmul %24, %27, %cst_18 {dimension_numbers = #tpu.dot_dimension_numbers<[1], [0], [0], [1], [0, 0, 1, 1], [], []>} : vector<16x17xbf16>, vector<17x1xbf16>, vector<16x1xf32> -> vector<16x1xf32>
    %c0_19 = arith.constant 0 : index
    %c0_20 = arith.constant 0 : index
    %29 = vector.load %arg9[%c0_19, %c0_20] : memref<16x1xf32, #tpu.memory_space<vmem>>, vector<16x1xf32>
    %30 = arith.addf %28, %29 : vector<16x1xf32>
    %cst_21 = arith.constant 0.000000e+00 : f32
    %31 = vector.broadcast %cst_21 : f32 to vector<16x1xf32>
    %32 = arith.subf %31, %30 : vector<16x1xf32>
    %33 = math.exp %32 : vector<16x1xf32>
    %cst_22 = arith.constant 1.000000e+00 : f32
    %34 = vector.broadcast %cst_22 : f32 to vector<16x1xf32>
    %35 = arith.addf %34, %33 : vector<16x1xf32>
    %36 = tpu.reciprocal %35 {approx = true} : vector<16x1xf32> -> vector<16x1xf32>
    %37 = arith.mulf %30, %36 : vector<16x1xf32>
    %c0_23 = arith.constant 0 : index
    %c0_24 = arith.constant 0 : index
    %38 = vector.load %arg10[%c0_23, %c0_24] : memref<16x16xbf16, #tpu.memory_space<vmem>>, vector<16x16xbf16>
    %39 = arith.truncf %37 : vector<16x1xf32> to vector<16x1xbf16>
    %cst_25 = arith.constant dense<0.000000e+00> : vector<16x1xf32>
    %40 = tpu.matmul %38, %39, %cst_25 {dimension_numbers = #tpu.dot_dimension_numbers<[1], [0], [0], [1], [0, 0, 1, 1], [], []>} : vector<16x16xbf16>, vector<16x1xbf16>, vector<16x1xf32> -> vector<16x1xf32>
    %c0_26 = arith.constant 0 : index
    %c0_27 = arith.constant 0 : index
    %41 = vector.load %arg11[%c0_26, %c0_27] : memref<16x1xf32, #tpu.memory_space<vmem>>, vector<16x1xf32>
    %42 = arith.addf %40, %41 : vector<16x1xf32>
    %c0_28 = arith.constant 0 : index
    %c0_29 = arith.constant 0 : index
    %43 = vector.load %arg12[%c0_28, %c0_29] : memref<8x16xbf16, #tpu.memory_space<vmem>>, vector<8x16xbf16>
    %44 = arith.truncf %42 : vector<16x1xf32> to vector<16x1xbf16>
    %cst_30 = arith.constant dense<0.000000e+00> : vector<8x1xf32>
    %45 = tpu.matmul %43, %44, %cst_30 {dimension_numbers = #tpu.dot_dimension_numbers<[1], [0], [0], [1], [0, 0, 1, 1], [], []>} : vector<8x16xbf16>, vector<16x1xbf16>, vector<8x1xf32> -> vector<8x1xf32>
    %c0_31 = arith.constant 0 : index
    %c0_32 = arith.constant 0 : index
    %46 = vector.load %arg13[%c0_31, %c0_32] : memref<8x1xf32, #tpu.memory_space<vmem>>, vector<8x1xf32>
    %47 = arith.addf %45, %46 : vector<8x1xf32>
    %cst_33 = arith.constant 0.000000e+00 : f32
    %48 = vector.broadcast %cst_33 : f32 to vector<8x1xf32>
    %49 = arith.subf %48, %47 : vector<8x1xf32>
    %50 = math.exp %49 : vector<8x1xf32>
    %cst_34 = arith.constant 1.000000e+00 : f32
    %51 = vector.broadcast %cst_34 : f32 to vector<8x1xf32>
    %52 = arith.addf %51, %50 : vector<8x1xf32>
    %53 = tpu.reciprocal %52 {approx = true} : vector<8x1xf32> -> vector<8x1xf32>
    %54 = arith.mulf %47, %53 : vector<8x1xf32>
    %c0_35 = arith.constant 0 : index
    %c0_36 = arith.constant 0 : index
    %55 = vector.load %arg15[%c0_35, %c0_36] : memref<8x1xf32, #tpu.memory_space<vmem>>, vector<8x1xf32>
    %56 = arith.truncf %12 : vector<2x32xf32> to vector<2x32xbf16>
    %c0_37 = arith.constant 0 : index
    %c1 = arith.constant 1 : index
    %57 = vector.load %arg27[%c0_37, %c1] : memref<8x34xbf16, #tpu.memory_space<vmem>>, vector<2x32xbf16>
    tpu.vector_store %arg27[%c0_37, %c1], %56 {strides = array<i32>} : memref<8x34xbf16, #tpu.memory_space<vmem>>, vector<2x32xbf16>,
    %c0_38 = arith.constant 0 : index
    %c0_39 = arith.constant 0 : index
    %58 = vector.load %arg27[%c0_38, %c0_39] : memref<8x34xbf16, #tpu.memory_space<vmem>>, vector<2x32xbf16>
    %c0_40 = arith.constant 0 : index
    %c1_41 = arith.constant 1 : index
    %59 = vector.load %arg27[%c0_40, %c1_41] : memref<8x34xbf16, #tpu.memory_space<vmem>>, vector<2x32xbf16>
    %c0_42 = arith.constant 0 : index
    %c2 = arith.constant 2 : index
    %60 = vector.load %arg27[%c0_42, %c2] : memref<8x34xbf16, #tpu.memory_space<vmem>>, vector<2x32xbf16>
    %61 = tpu.concatenate %58, %59, %60 in 0 : vector<2x32xbf16>, vector<2x32xbf16>, vector<2x32xbf16> -> vector<6x32xbf16>
    %c0_43 = arith.constant 0 : index
    %c0_44 = arith.constant 0 : index
    %62 = vector.load %arg14[%c0_43, %c0_44] : memref<8x6xbf16, #tpu.memory_space<vmem>>, vector<8x6xbf16>
    %cst_45 = arith.constant dense<0.000000e+00> : vector<8x32xf32>
    %63 = tpu.matmul %62, %61, %cst_45 {dimension_numbers = #tpu.dot_dimension_numbers<[1], [0], [0], [1], [0, 0, 1, 1], [], []>} : vector<8x6xbf16>, vector<6x32xbf16>, vector<8x32xf32> -> vector<8x32xf32>
    %64 = vector.broadcast %55 : vector<8x1xf32> to vector<8x32xf32>
    %65 = arith.addf %63, %64 : vector<8x32xf32>
    %c0_46 = arith.constant 0 : index
    %c0_47 = arith.constant 0 : index
    %66 = vector.load %arg16[%c0_46, %c0_47] : memref<8x1xf32, #tpu.memory_space<vmem>>, vector<8x1xf32>
    %c0_48 = arith.constant 0 : index
    %c0_49 = arith.constant 0 : index
    %67 = vector.load %arg17[%c0_48, %c0_49] : memref<8x1xf32, #tpu.memory_space<vmem>>, vector<8x1xf32>
    %cst_50 = arith.constant dense<0.000000e+00> : vector<8xf32>
    %68 = vector.multi_reduction <add>, %65, %cst_50 [1] : vector<8x32xf32> to vector<8xf32>
    %69 = vector.shape_cast %68 : vector<8xf32> to vector<8x1xf32>
    %70 = arith.mulf %65, %65 : vector<8x32xf32>
    %cst_51 = arith.constant dense<0.000000e+00> : vector<8xf32>
    %71 = vector.multi_reduction <add>, %70, %cst_51 [1] : vector<8x32xf32> to vector<8xf32>
    %72 = vector.shape_cast %71 : vector<8xf32> to vector<8x1xf32>
    %73 = tpu.concatenate %69, %72 in 1 : vector<8x1xf32>, vector<8x1xf32> -> vector<8x2xf32>
    %cst_52 = arith.constant dense<0.000000e+00> : vector<4x2xf32>
    %74 = tpu.matmul %23, %73, %cst_52 {dimension_numbers = #tpu.dot_dimension_numbers<[1], [0], [0], [1], [0, 0, 1, 1], [], []>} : vector<4x8xf32>, vector<8x2xf32>, vector<4x2xf32> -> vector<4x2xf32>
    %cst_53 = arith.constant dense<0.000000e+00> : vector<8x2xf32>
    %75 = tpu.matmul %22, %74, %cst_53 {dimension_numbers = #tpu.dot_dimension_numbers<[1], [0], [0], [1], [0, 0, 1, 1], [], []>} : vector<8x4xf32>, vector<4x2xf32>, vector<8x2xf32> -> vector<8x2xf32>
    %76 = vector.extract_strided_slice %75 {offsets = [0, 0], sizes = [8, 1], strides = [1, 1]} : vector<8x2xf32> to vector<8x1xf32>
    %cst_54 = arith.constant 1.562500e-02 : f32
    %77 = vector.broadcast %cst_54 : f32 to vector<8x1xf32>
    %78 = arith.mulf %76, %77 : vector<8x1xf32>
    %79 = vector.extract_strided_slice %75 {offsets = [0, 1], sizes = [8, 1], strides = [1, 1]} : vector<8x2xf32> to vector<8x1xf32>
    %cst_55 = arith.constant 1.562500e-02 : f32
    %80 = vector.broadcast %cst_55 : f32 to vector<8x1xf32>
    %81 = arith.mulf %79, %80 : vector<8x1xf32>
    %82 = arith.mulf %78, %78 : vector<8x1xf32>
    %83 = arith.subf %81, %82 : vector<8x1xf32>
    %cst_56 = arith.constant 0.000000e+00 : f32
    %84 = vector.broadcast %cst_56 : f32 to vector<8x1xf32>
    %85 = arith.maximumf %83, %84 : vector<8x1xf32>
    %cst_57 = arith.constant 9.99999974E-6 : f32
    %86 = vector.broadcast %cst_57 : f32 to vector<8x1xf32>
    %87 = arith.addf %85, %86 : vector<8x1xf32>
    %88 = math.rsqrt %87 : vector<8x1xf32>
    %89 = arith.mulf %88, %66 : vector<8x1xf32>
    %90 = arith.mulf %78, %89 : vector<8x1xf32>
    %91 = arith.subf %67, %90 : vector<8x1xf32>
    %92 = vector.broadcast %89 : vector<8x1xf32> to vector<8x32xf32>
    %93 = arith.mulf %65, %92 : vector<8x32xf32>
    %94 = vector.broadcast %91 : vector<8x1xf32> to vector<8x32xf32>
    %95 = arith.addf %93, %94 : vector<8x32xf32>
    %cst_58 = arith.constant 0.000000e+00 : f32
    %96 = vector.broadcast %cst_58 : f32 to vector<8x32xf32>
    %97 = arith.subf %96, %95 : vector<8x32xf32>
    %98 = math.exp %97 : vector<8x32xf32>
    %cst_59 = arith.constant 1.000000e+00 : f32
    %99 = vector.broadcast %cst_59 : f32 to vector<8x32xf32>
    %100 = arith.addf %99, %98 : vector<8x32xf32>
    %101 = tpu.reciprocal %100 {approx = true} : vector<8x32xf32> -> vector<8x32xf32>
    %102 = arith.mulf %95, %101 : vector<8x32xf32>
    %c0_60 = arith.constant 0 : index
    %c0_61 = arith.constant 0 : index
    %103 = vector.load %arg19[%c0_60, %c0_61] : memref<8x1xf32, #tpu.memory_space<vmem>>, vector<8x1xf32>
    %104 = arith.truncf %102 : vector<8x32xf32> to vector<8x32xbf16>
    %c0_62 = arith.constant 0 : index
    %c1_63 = arith.constant 1 : index
    %105 = vector.load %arg27[%c0_62, %c1_63] : memref<8x34xbf16, #tpu.memory_space<vmem>>, vector<8x32xbf16>
    tpu.vector_store %arg27[%c0_62, %c1_63], %104 {strides = array<i32>} : memref<8x34xbf16, #tpu.memory_space<vmem>>, vector<8x32xbf16>,
    %c0_64 = arith.constant 0 : index
    %c0_65 = arith.constant 0 : index
    %106 = vector.load %arg27[%c0_64, %c0_65] : memref<8x34xbf16, #tpu.memory_space<vmem>>, vector<8x32xbf16>
    %c0_66 = arith.constant 0 : index
    %c1_67 = arith.constant 1 : index
    %107 = vector.load %arg27[%c0_66, %c1_67] : memref<8x34xbf16, #tpu.memory_space<vmem>>, vector<8x32xbf16>
    %c0_68 = arith.constant 0 : index
    %c2_69 = arith.constant 2 : index
    %108 = vector.load %arg27[%c0_68, %c2_69] : memref<8x34xbf16, #tpu.memory_space<vmem>>, vector<8x32xbf16>
    %109 = tpu.concatenate %106, %107, %108 in 0 : vector<8x32xbf16>, vector<8x32xbf16>, vector<8x32xbf16> -> vector<24x32xbf16>
    %c0_70 = arith.constant 0 : index
    %c0_71 = arith.constant 0 : index
    %110 = vector.load %arg18[%c0_70, %c0_71] : memref<8x24xbf16, #tpu.memory_space<vmem>>, vector<8x24xbf16>
    %cst_72 = arith.constant dense<0.000000e+00> : vector<8x32xf32>
    %111 = tpu.matmul %110, %109, %cst_72 {dimension_numbers = #tpu.dot_dimension_numbers<[1], [0], [0], [1], [0, 0, 1, 1], [], []>} : vector<8x24xbf16>, vector<24x32xbf16>, vector<8x32xf32> -> vector<8x32xf32>
    %112 = vector.broadcast %103 : vector<8x1xf32> to vector<8x32xf32>
    %113 = arith.addf %111, %112 : vector<8x32xf32>
    %114 = vector.broadcast %54 : vector<8x1xf32> to vector<8x32xf32>
    %115 = arith.addf %113, %114 : vector<8x32xf32>
    %c0_73 = arith.constant 0 : index
    %c0_74 = arith.constant 0 : index
    %116 = vector.load %arg20[%c0_73, %c0_74] : memref<8x1xf32, #tpu.memory_space<vmem>>, vector<8x1xf32>
    %c0_75 = arith.constant 0 : index
    %c0_76 = arith.constant 0 : index
    %117 = vector.load %arg21[%c0_75, %c0_76] : memref<8x1xf32, #tpu.memory_space<vmem>>, vector<8x1xf32>
    %cst_77 = arith.constant dense<0.000000e+00> : vector<8xf32>
    %118 = vector.multi_reduction <add>, %115, %cst_77 [1] : vector<8x32xf32> to vector<8xf32>
    %119 = vector.shape_cast %118 : vector<8xf32> to vector<8x1xf32>
    %120 = arith.mulf %115, %115 : vector<8x32xf32>
    %cst_78 = arith.constant dense<0.000000e+00> : vector<8xf32>
    %121 = vector.multi_reduction <add>, %120, %cst_78 [1] : vector<8x32xf32> to vector<8xf32>
    %122 = vector.shape_cast %121 : vector<8xf32> to vector<8x1xf32>
    %123 = tpu.concatenate %119, %122 in 1 : vector<8x1xf32>, vector<8x1xf32> -> vector<8x2xf32>
    %cst_79 = arith.constant dense<0.000000e+00> : vector<4x2xf32>
    %124 = tpu.matmul %23, %123, %cst_79 {dimension_numbers = #tpu.dot_dimension_numbers<[1], [0], [0], [1], [0, 0, 1, 1], [], []>} : vector<4x8xf32>, vector<8x2xf32>, vector<4x2xf32> -> vector<4x2xf32>
    %cst_80 = arith.constant dense<0.000000e+00> : vector<8x2xf32>
    %125 = tpu.matmul %22, %124, %cst_80 {dimension_numbers = #tpu.dot_dimension_numbers<[1], [0], [0], [1], [0, 0, 1, 1], [], []>} : vector<8x4xf32>, vector<4x2xf32>, vector<8x2xf32> -> vector<8x2xf32>
    %126 = vector.extract_strided_slice %125 {offsets = [0, 0], sizes = [8, 1], strides = [1, 1]} : vector<8x2xf32> to vector<8x1xf32>
    %cst_81 = arith.constant 1.562500e-02 : f32
    %127 = vector.broadcast %cst_81 : f32 to vector<8x1xf32>
    %128 = arith.mulf %126, %127 : vector<8x1xf32>
    %129 = vector.extract_strided_slice %125 {offsets = [0, 1], sizes = [8, 1], strides = [1, 1]} : vector<8x2xf32> to vector<8x1xf32>
    %cst_82 = arith.constant 1.562500e-02 : f32
    %130 = vector.broadcast %cst_82 : f32 to vector<8x1xf32>
    %131 = arith.mulf %129, %130 : vector<8x1xf32>
    %132 = arith.mulf %128, %128 : vector<8x1xf32>
    %133 = arith.subf %131, %132 : vector<8x1xf32>
    %cst_83 = arith.constant 0.000000e+00 : f32
    %134 = vector.broadcast %cst_83 : f32 to vector<8x1xf32>
    %135 = arith.maximumf %133, %134 : vector<8x1xf32>
    %cst_84 = arith.constant 9.99999974E-6 : f32
    %136 = vector.broadcast %cst_84 : f32 to vector<8x1xf32>
    %137 = arith.addf %135, %136 : vector<8x1xf32>
    %138 = math.rsqrt %137 : vector<8x1xf32>
    %139 = arith.mulf %138, %116 : vector<8x1xf32>
    %140 = arith.mulf %128, %139 : vector<8x1xf32>
    %141 = arith.subf %117, %140 : vector<8x1xf32>
    %142 = vector.broadcast %139 : vector<8x1xf32> to vector<8x32xf32>
    %143 = arith.mulf %115, %142 : vector<8x32xf32>
    %144 = vector.broadcast %141 : vector<8x1xf32> to vector<8x32xf32>
    %145 = arith.addf %143, %144 : vector<8x32xf32>
    %cst_85 = arith.constant 0.000000e+00 : f32
    %146 = vector.broadcast %cst_85 : f32 to vector<8x32xf32>
    %147 = arith.subf %146, %145 : vector<8x32xf32>
    %148 = math.exp %147 : vector<8x32xf32>
    %cst_86 = arith.constant 1.000000e+00 : f32
    %149 = vector.broadcast %cst_86 : f32 to vector<8x32xf32>
    %150 = arith.addf %149, %148 : vector<8x32xf32>
    %151 = tpu.reciprocal %150 {approx = true} : vector<8x32xf32> -> vector<8x32xf32>
    %152 = arith.mulf %145, %151 : vector<8x32xf32>
    %c0_87 = arith.constant 0 : index
    %c0_88 = arith.constant 0 : index
    %153 = vector.load %arg23[%c0_87, %c0_88] : memref<8x1xf32, #tpu.memory_space<vmem>>, vector<8x1xf32>
    %154 = arith.truncf %152 : vector<8x32xf32> to vector<8x32xbf16>
    %c0_89 = arith.constant 0 : index
    %c1_90 = arith.constant 1 : index
    %155 = vector.load %arg27[%c0_89, %c1_90] : memref<8x34xbf16, #tpu.memory_space<vmem>>, vector<8x32xbf16>
    tpu.vector_store %arg27[%c0_89, %c1_90], %154 {strides = array<i32>} : memref<8x34xbf16, #tpu.memory_space<vmem>>, vector<8x32xbf16>,
    %c0_91 = arith.constant 0 : index
    %c0_92 = arith.constant 0 : index
    %156 = vector.load %arg27[%c0_91, %c0_92] : memref<8x34xbf16, #tpu.memory_space<vmem>>, vector<8x32xbf16>
    %c0_93 = arith.constant 0 : index
    %c1_94 = arith.constant 1 : index
    %157 = vector.load %arg27[%c0_93, %c1_94] : memref<8x34xbf16, #tpu.memory_space<vmem>>, vector<8x32xbf16>
    %c0_95 = arith.constant 0 : index
    %c2_96 = arith.constant 2 : index
    %158 = vector.load %arg27[%c0_95, %c2_96] : memref<8x34xbf16, #tpu.memory_space<vmem>>, vector<8x32xbf16>
    %159 = tpu.concatenate %156, %157, %158 in 0 : vector<8x32xbf16>, vector<8x32xbf16>, vector<8x32xbf16> -> vector<24x32xbf16>
    %c0_97 = arith.constant 0 : index
    %c0_98 = arith.constant 0 : index
    %160 = vector.load %arg22[%c0_97, %c0_98] : memref<8x24xbf16, #tpu.memory_space<vmem>>, vector<8x24xbf16>
    %cst_99 = arith.constant dense<0.000000e+00> : vector<8x32xf32>
    %161 = tpu.matmul %160, %159, %cst_99 {dimension_numbers = #tpu.dot_dimension_numbers<[1], [0], [0], [1], [0, 0, 1, 1], [], []>} : vector<8x24xbf16>, vector<24x32xbf16>, vector<8x32xf32> -> vector<8x32xf32>
    %162 = vector.broadcast %153 : vector<8x1xf32> to vector<8x32xf32>
    %163 = arith.addf %161, %162 : vector<8x32xf32>
    %164 = arith.addf %65, %163 : vector<8x32xf32>
    %c0_100 = arith.constant 0 : index
    %c0_101 = arith.constant 0 : index
    %165 = vector.load %arg24[%c0_100, %c0_101] : memref<2x8xbf16, #tpu.memory_space<vmem>>, vector<2x8xbf16>
    %166 = arith.truncf %164 : vector<8x32xf32> to vector<8x32xbf16>
    %cst_102 = arith.constant dense<0.000000e+00> : vector<2x32xf32>
    %167 = tpu.matmul %165, %166, %cst_102 {dimension_numbers = #tpu.dot_dimension_numbers<[1], [0], [0], [1], [0, 0, 1, 1], [], []>} : vector<2x8xbf16>, vector<8x32xbf16>, vector<2x32xf32> -> vector<2x32xf32>
    %c0_103 = arith.constant 0 : index
    %c0_104 = arith.constant 0 : index
    %168 = vector.load %arg25[%c0_103, %c0_104] : memref<2x1xf32, #tpu.memory_space<vmem>>, vector<2x1xf32>
    %169 = vector.broadcast %168 : vector<2x1xf32> to vector<2x32xf32>
    %170 = arith.addf %167, %169 : vector<2x32xf32>
    %171 = arith.subf %170, %17 : vector<2x32xf32>
    %172 = arith.mulf %171, %171 : vector<2x32xf32>
    %cst_105 = arith.constant dense<0.000000e+00> : vector<2xf32>
    %173 = vector.multi_reduction <add>, %172, %cst_105 [1] : vector<2x32xf32> to vector<2xf32>
    %174 = vector.shape_cast %173 : vector<2xf32> to vector<2x1xf32>
    %cst_106 = arith.constant dense<0.000000e+00> : vector<1xf32>
    %175 = vector.multi_reduction <add>, %174, %cst_106 [0] : vector<2x1xf32> to vector<1xf32>
    %176 = vector.shape_cast %175 : vector<1xf32> to vector<1x1xf32>
    %c0_107 = arith.constant 0 : index
    %c0_108 = arith.constant 0 : index
    %c0_109 = arith.constant 0 : index
    %177 = vector.load %arg26[%c0_107, %c0_108, %c0_109] : memref<1x1x1xf32, #tpu.memory_space<vmem>>, vector<1x1x1xf32>
    %178 = vector.shape_cast %177 : vector<1x1x1xf32> to vector<1x1xf32>
    %179 = vector.shape_cast %176 : vector<1x1xf32> to vector<1x1x1xf32>
    tpu.vector_store %arg26[%c0_107, %c0_108, %c0_109], %179 {strides = array<i32>} : memref<1x1x1xf32, #tpu.memory_space<vmem>>, vector<1x1x1xf32>,
    return
  }
  func.func @transform_0(%arg0: i32) -> i32 {
    %c0_i32 = arith.constant 0 : i32
    %c0_i32_0 = arith.constant 0 : i32
    return %c0_i32 : i32
  }
  func.func @transform_1(%arg0: i32) -> i32 {
    %c0_i32 = arith.constant 0 : i32
    %c0_i32_0 = arith.constant 0 : i32
    return %c0_i32 : i32
  }
  func.func @transform_2(%arg0: i32) -> (i32, i32, i32) {
    %c0_i32 = arith.constant 0 : i32
    %c0_i32_0 = arith.constant 0 : i32
    %c0_i32_1 = arith.constant 0 : i32
    return %arg0, %c0_i32, %c0_i32_0 : i32, i32, i32
  }
  func.func @transform_3(%arg0: i32) -> (i32, i32, i32) {
    %c0_i32 = arith.constant 0 : i32
    %c0_i32_0 = arith.constant 0 : i32
    %c0_i32_1 = arith.constant 0 : i32
    return %arg0, %c0_i32, %c0_i32_0 : i32, i32, i32
  }
  func.func @transform_4(%arg0: i32) -> (i32, i32, i32) {
    %c0_i32 = arith.constant 0 : i32
    %c0_i32_0 = arith.constant 0 : i32
    %c0_i32_1 = arith.constant 0 : i32
    return %arg0, %c0_i32, %c0_i32_0 : i32, i32, i32
  }
  func.func @transform_5(%arg0: i32) -> (i32, i32) {
    %c0_i32 = arith.constant 0 : i32
    %c0_i32_0 = arith.constant 0 : i32
    %c0_i32_1 = arith.constant 0 : i32
    return %c0_i32, %c0_i32_0 : i32, i32
  }
  func.func @transform_6(%arg0: i32) -> (i32, i32) {
    %c0_i32 = arith.constant 0 : i32
    %c0_i32_0 = arith.constant 0 : i32
    %c0_i32_1 = arith.constant 0 : i32
    return %c0_i32, %c0_i32_0 : i32, i32
  }
  func.func @transform_7(%arg0: i32) -> (i32, i32) {
    %c0_i32 = arith.constant 0 : i32
    %c0_i32_0 = arith.constant 0 : i32
    %c0_i32_1 = arith.constant 0 : i32
    return %c0_i32, %c0_i32_0 : i32, i32
  }
  func.func @transform_8(%arg0: i32) -> (i32, i32) {
    %c0_i32 = arith.constant 0 : i32
    %c0_i32_0 = arith.constant 0 : i32
    %c0_i32_1 = arith.constant 0 : i32
    return %c0_i32, %c0_i32_0 : i32, i32
  }
  func.func @transform_9(%arg0: i32) -> (i32, i32) {
    %c0_i32 = arith.constant 0 : i32
    %c0_i32_0 = arith.constant 0 : i32
    %c0_i32_1 = arith.constant 0 : i32
    return %c0_i32, %c0_i32_0 : i32, i32
  }
  func.func @transform_10(%arg0: i32) -> (i32, i32) {
    %c0_i32 = arith.constant 0 : i32
    %c0_i32_0 = arith.constant 0 : i32
    %c0_i32_1 = arith.constant 0 : i32
    return %c0_i32, %c0_i32_0 : i32, i32
  }
  func.func @transform_11(%arg0: i32) -> (i32, i32) {
    %c0_i32 = arith.constant 0 : i32
    %c0_i32_0 = arith.constant 0 : i32
    %c0_i32_1 = arith.constant 0 : i32
    return %c0_i32, %c0_i32_0 : i32, i32
  }
  func.func @transform_12(%arg0: i32) -> (i32, i32) {
    %c0_i32 = arith.constant 0 : i32
    %c0_i32_0 = arith.constant 0 : i32
    %c0_i32_1 = arith.constant 0 : i32
    return %c0_i32, %c0_i32_0 : i32, i32
  }
  func.func @transform_13(%arg0: i32) -> (i32, i32) {
    %c0_i32 = arith.constant 0 : i32
    %c0_i32_0 = arith.constant 0 : i32
    %c0_i32_1 = arith.constant 0 : i32
    return %c0_i32, %c0_i32_0 : i32, i32
  }
  func.func @transform_14(%arg0: i32) -> (i32, i32) {
    %c0_i32 = arith.constant 0 : i32
    %c0_i32_0 = arith.constant 0 : i32
    %c0_i32_1 = arith.constant 0 : i32
    return %c0_i32, %c0_i32_0 : i32, i32
  }
  func.func @transform_15(%arg0: i32) -> (i32, i32) {
    %c0_i32 = arith.constant 0 : i32
    %c0_i32_0 = arith.constant 0 : i32
    %c0_i32_1 = arith.constant 0 : i32
    return %c0_i32, %c0_i32_0 : i32, i32
  }
  func.func @transform_16(%arg0: i32) -> (i32, i32) {
    %c0_i32 = arith.constant 0 : i32
    %c0_i32_0 = arith.constant 0 : i32
    %c0_i32_1 = arith.constant 0 : i32
    return %c0_i32, %c0_i32_0 : i32, i32
  }
  func.func @transform_17(%arg0: i32) -> (i32, i32) {
    %c0_i32 = arith.constant 0 : i32
    %c0_i32_0 = arith.constant 0 : i32
    %c0_i32_1 = arith.constant 0 : i32
    return %c0_i32, %c0_i32_0 : i32, i32
  }
  func.func @transform_18(%arg0: i32) -> (i32, i32) {
    %c0_i32 = arith.constant 0 : i32
    %c0_i32_0 = arith.constant 0 : i32
    %c0_i32_1 = arith.constant 0 : i32
    return %c0_i32, %c0_i32_0 : i32, i32
  }
  func.func @transform_19(%arg0: i32) -> (i32, i32) {
    %c0_i32 = arith.constant 0 : i32
    %c0_i32_0 = arith.constant 0 : i32
    %c0_i32_1 = arith.constant 0 : i32
    return %c0_i32, %c0_i32_0 : i32, i32
  }
  func.func @transform_20(%arg0: i32) -> (i32, i32) {
    %c0_i32 = arith.constant 0 : i32
    %c0_i32_0 = arith.constant 0 : i32
    %c0_i32_1 = arith.constant 0 : i32
    return %c0_i32, %c0_i32_0 : i32, i32
  }
  func.func @transform_21(%arg0: i32) -> (i32, i32) {
    %c0_i32 = arith.constant 0 : i32
    %c0_i32_0 = arith.constant 0 : i32
    %c0_i32_1 = arith.constant 0 : i32
    return %c0_i32, %c0_i32_0 : i32, i32
  }
  func.func @transform_22(%arg0: i32) -> (i32, i32) {
    %c0_i32 = arith.constant 0 : i32
    %c0_i32_0 = arith.constant 0 : i32
    %c0_i32_1 = arith.constant 0 : i32
    return %c0_i32, %c0_i32_0 : i32, i32
  }
  func.func @transform_23(%arg0: i32) -> (i32, i32) {
    %c0_i32 = arith.constant 0 : i32
    %c0_i32_0 = arith.constant 0 : i32
    %c0_i32_1 = arith.constant 0 : i32
    return %c0_i32, %c0_i32_0 : i32, i32
  }
  func.func @transform_24(%arg0: i32) -> (i32, i32) {
    %c0_i32 = arith.constant 0 : i32
    %c0_i32_0 = arith.constant 0 : i32
    %c0_i32_1 = arith.constant 0 : i32
    return %c0_i32, %c0_i32_0 : i32, i32
  }
  func.func @transform_25(%arg0: i32) -> (i32, i32, i32) {
    %c0_i32 = arith.constant 0 : i32
    %c0_i32_0 = arith.constant 0 : i32
    %c0_i32_1 = arith.constant 0 : i32
    return %arg0, %c0_i32, %c0_i32_0 : i32, i32, i32
  }
}

</mosaic_0001>

<bundles_post_ra>
// kernel: _lambda_.1
= control target key start
LH: loop header
LB: loop body
LE: loop exit
PB: predicated region body
PF: predicated region fallthrough
CT: control target
= control target key end

     0   :  { %s2447_s0 = inlined_call_operand.vmem [shape: f32[2], index: 0, kind: input, shape index: {}]   ;;  %s2448_s1 = inlined_call_operand.vmem [shape: f32[2], index: 1, kind: input, shape index: {}]   ;;  %s2449_s2 = inlined_call_operand.vmem [shape: f32[2,2,32], index: 2, kind: input, shape index: {}]   ;;  %s2450_s3 = inlined_call_operand.vmem [shape: f32[2,2,32], index: 3, kind: input, shape index: {}]   ;;  %s2451_s4 = inlined_call_operand.vmem [shape: f32[2,17,1], index: 4, kind: input, shape index: {}]   ;;  %s2452_s5 = inlined_call_operand.vmem [shape: f32[8,4], index: 5, kind: input, shape index: {}]   ;;  %s2453_s6 = inlined_call_operand.vmem [shape: f32[4,8], index: 6, kind: input, shape index: {}]   ;;  %s2454_s7 = inlined_call_operand.vmem [shape: bf16[16,17], index: 7, kind: input, shape index: {}]   ;;  %s2455_s8 = inlined_call_operand.vmem [shape: f32[16,1], index: 8, kind: input, shape index: {}]   ;;  %s2456_s9 = inlined_call_operand.vmem [shape: bf16[16,16], index: 9, kind: input, shape index: {}]   ;;  %s2457_s10 = inlined_call_operand.vmem [shape: f32[16,1], index: 10, kind: input, shape index: {}]   ;;  %s2458_s11 = inlined_call_operand.vmem [shape: bf16[8,16], index: 11, kind: input, shape index: {}]   ;;  %s2459_s12 = inlined_call_operand.vmem [shape: f32[8,1], index: 12, kind: input, shape index: {}]   ;;  %s2460_s13 = inlined_call_operand.vmem [shape: bf16[8,6], index: 13, kind: input, shape index: {}]   ;;  %s2461_s14 = inlined_call_operand.vmem [shape: f32[8,1], index: 14, kind: input, shape index: {}]   ;;  %s2462_s15 = inlined_call_operand.vmem [shape: f32[8,1], index: 15, kind: input, shape index: {}]   ;;  %s2463_s16 = inlined_call_operand.vmem [shape: f32[8,1], index: 16, kind: input, shape index: {}]   ;;  %s2464_s17 = inlined_call_operand.vmem [shape: bf16[8,24], index: 17, kind: input, shape index: {}]   ;;  %s2465_s18 = inlined_call_operand.vmem [shape: f32[8,1], index: 18, kind: input, shape index: {}]   ;;  %s2466_s19 = inlined_call_operand.vmem [shape: f32[8,1], index: 19, kind: input, shape index: {}]   ;;  %s2467_s20 = inlined_call_operand.vmem [shape: f32[8,1], index: 20, kind: input, shape index: {}]   ;;  %s2468_s21 = inlined_call_operand.vmem [shape: bf16[8,24], index: 21, kind: input, shape index: {}]   ;;  %s2469_s22 = inlined_call_operand.vmem [shape: f32[8,1], index: 22, kind: input, shape index: {}]   ;;  %s2470_s23 = inlined_call_operand.vmem [shape: bf16[2,8], index: 23, kind: input, shape index: {}]   ;;  %s2471_s24 = inlined_call_operand.vmem [shape: f32[2,1], index: 24, kind: input, shape index: {}]   ;;  %s2472_s25 = inlined_call_operand.vmem [shape: f32[2,1,1], index: 25, kind: output, shape index: {}]  }
   0x1   :  { %2477 = sst [smem:[#allocation10_spill]] %s2447_s0 }
   0x2   :  { %2478 = sst [smem:[#allocation11_spill]] %s2448_s1 }
   0x3   :  { %2479 = sst [smem:[#allocation12_spill]] %s2449_s2 }
   0x4   :  { %2480 = sst [smem:[#allocation13_spill]] %s2450_s3 }
   0x5   :  { %2481 = sst [smem:[#allocation14_spill]] %s2451_s4 }
   0x6   :  { %2482 = sst [smem:[#allocation15_spill]] %s2452_s5 }
   0x7   :  { %2483 = sst [smem:[#allocation16_spill]] %s2453_s6 }
   0x8   :  { %2484 = sst [smem:[#allocation17_spill]] %s2454_s7 }
   0x9   :  { %2485 = sst [smem:[#allocation18_spill]] %s2455_s8 }
   0xa   :  { %2486 = sst [smem:[#allocation19_spill]] %s2456_s9 }
   0xb   :  { %2487 = sst [smem:[#allocation20_spill]] %s2470_s23 }
   0xc   :  { %2488 = sst [smem:[#allocation21_spill]] %s2472_s25 }
   0xd   :  { %30 = vsyncpa [#allocation4], 0 }
   0xe   :  { %31 = vsyncpa [#allocation6], 0  ;;  %s2202_s29 = smov 0  }
   0xf LB: > { %2489 = sst [smem:[#allocation9_spill]] %s2061_s29  ;;  %s2208_s2 = sadd.s32 4294967295, %s2061_s29   ;;  %s2061_s29 = sphi %s2202_s29, %s37_s29  }
  0x10   : > { %p1816_p0 = scmp.ge.s32.totalorder %s2061_s29, 1  ;;  %p608_p1 = scmp.lt.s32.totalorder %s2061_s29, 3 }
  0x11   : > { %s2490_s7 = sld [smem:[#allocation10_spill]]  ;;  %p2474_p3 = scmp.eq.s32.totalorder %s2208_s2, 0 }
  0x12   : > { %p2215_p2 = pnand %p1816_p0, %p608_p1  ;;  %s2492_s27 = sld [smem:[#allocation11_spill]] }
  0x14   : > { %s2491_s26 = scalar_select %p2215_p2, 1, 0 }
  0x15   : > { %p1954_p4 = pneg %p2215_p2 }
  0x17   : > { %s621_s3 = sshll.u32 %s2490_s7, 4  ;;  %p2227_p5 = pnand %p2474_p3, %p1954_p4  ;;  %s622_s3 = int_to_ptr.vmem [resolvable:$true] %s621_s3 }
  0x18   : > { %s632_s4 = sshll.u32 %s2492_s27, 4  ;;  %s2017_s9 = scalar_lea.vmem %s622_s3, 16  ;;  %s633_s4 = int_to_ptr.vmem [resolvable:$true] %s632_s4 }
  0x19   : > { %p2018_p6 = scmp.ne.s32.totalorder %s622_s3, %s2017_s9  ;;  %p2019_p7 = pneg %p2227_p5 }
  0x1a   : > { %p2025_p10 = scmp.lt.s32.totalorder %s622_s3, %s622_s3  ;;  %p2026_p11 = scmp.lt.s32.totalorder %s2017_s9, %s2017_s9 }
  0x1b   : > { %p2020_p8 = pnand %p2019_p7, %p2018_p6 }
  0x1c   : > { %p2027_p12 = por %p2026_p11, %p2025_p10 }
  0x1d   : > { %p2021_p9 = pneg %p2020_p8 }
  0x1f   : > { %p2028_p13 = pnand %p2027_p12, %p2021_p9 }
  0x21   : > { %2031 = shalt.err (!%p2028_p13)
}
  0x22   : > { %s2063_s5 = smov [#allocation3]   ;;  %s2032_s0 = scalar_lea.vmem %s633_s4, 16 }
  0x23   : > { %1957 = dma.vmem_to_smem (!%p2227_p5), %s622_s3, 16, %s2063_s5, [#allocation4]  }
  0x24   : > { %p2033_p0 = scmp.ne.s32.totalorder %s633_s4, %s2032_s0  ;;  %p2040_p3 = scmp.lt.s32.totalorder %s633_s4, %s633_s4 }
  0x25   : > { %p2041_p2 = scmp.lt.s32.totalorder %s2032_s0, %s2032_s0 }
  0x26   : > { %p2035_p1 = pnand %p2033_p0, %p2019_p7 }
  0x27   : > { %p2042_p6 = por %p2041_p2, %p2040_p3 }
  0x28   : > { %p2036_p4 = pneg %p2035_p1 }
  0x2a   : > { %p2043_p8 = pnand %p2042_p6, %p2036_p4 }
  0x2c   : > { %2046 = shalt.err (!%p2043_p8)
}
  0x2d   : > { %s2064_s6 = smov [#allocation5]   ;;  %p2494_p9 = scmp.ne.s32.totalorder %s2491_s26, 0 }
  0x2e   : > { %1960 = dma.vmem_to_smem (!%p2227_p5), %s633_s4, 16, %s2064_s6, [#allocation6]  }
  0x2f   : > { %727 = sbr.rel (%p2494_p9) target bundleno = 3832 (0xef8), region = 120  ;;  %p2495_p10 = scmp.eq.s32.totalorder (!%p2494_p9), %s2208_s2, 0 }
  0x36   : > { %2052 = dma.done.wait (%p2495_p10), [#allocation4], 16   ;;  %p2496_p11 = pmov %p2495_p10 }
  0x37   : > { %p2497_p7 = pmov %p2495_p10 }
  0x38   : > { %2054 = vsyncadd (%p2496_p11), [#allocation4], 4294967280 }
  0x39   : > { %2056 = dma.done.wait (%p2497_p7), [#allocation6], 16   ;;  %p2498_p2 = pmov %p2497_p7 }
  0x3b   : > { %2058 = vsyncadd (%p2498_p2), [#allocation6], 4294967280 }
  0x3c   : > { %737 = sfence }
  0x3d   : > { %p806_p3 = scmp.lt.s32.totalorder %s2208_s2, 1  ;;  %s823_s30 = sld [smem:[#allocation3 + %s2208_s2]]  ;;  %v2065_v0 = vmov 0.0   ;;  %vm2066_vm0 = vmmov 0   ;;  %vm835_vm1 = vcmask 3072   ;;  %vm837_vm2 = vcmask 273672  }
  0x3e   : > { %s2250_s7 = sld [smem:[#allocation5 + %s2208_s2]]  ;;  %1877 = vmatprep.subr.bf16.mxu0 %v2065_v0  ;;  %1881 = vmatprep.mubr.msk.bf16.mxu0 %vm2066_vm0, %v2065_v0  ;;  %v2067_v1 = vmov 0   ;;  %vm859_vm3 = vcmask 1040384   ;;  %vm855_vm4 = vcmask 138240   ;;  %vm1033_vm5 = vcmask 262152   ;;  %v1025_v25 = vld [vmem:[%s2461_s14] sm:$0xff] }
  0x3f   : > { %s2511_s2 = smov (!%p806_p3, %s2208_s2), 1  ;;  %1982 = vset.pattern.permute.xlu1 %v2067_v1  ;;  %1885 = vmatprep.subr.bf16.mxu1 %v2065_v0  ;;  %836 = vst.msk [vmem:[#allocation2] sm:$0xf] %vm835_vm1, %v2067_v1  ;;  %s2499_s27 = sld [smem:[#allocation12_spill]]  ;;  %v861_v11 = vsel %vm859_vm3, 65535, %v2067_v1  ;;  %vm1048_vm6 = vcmask 1041408  }
  0x40   : > { %1887 = vmatprep.mubr.msk.bf16.mxu1 %vm2066_vm0, %v2065_v0  ;;  %1984 = vset.pattern.permute.xlu0 %v2067_v1  ;;  %s1823_s3 = sshll.u32 %s2511_s2, 1  ;;  %s1945_s26 = smul.u32 24, %s2511_s2  ;;  %838 = vst.msk [vmem:[#allocation2] sm:$0xf] %vm837_vm2, %v2067_v1  ;;  %vm1061_vm7 = vcmask 1042432   ;;  %vm1057_vm8 = vcmask 48128  }
  0x41   : > { %s2500_s5 = sld [smem:[#allocation13_spill]]  ;;  %s2501_s25 = sld [smem:[#allocation14_spill]]  ;;  %v1051_v48 = vld [vmem:[%s2460_s13] sm:$0xf]  ;;  %vm928_vm9 = vcmask 130048   ;;  %vm1106_vm10 = vcmask 261120  }
  0x42   : > { %s2504_s29 = sld [smem:[#allocation19_spill]]  ;;  %v921_v62 = vld [vmem:[%s2457_s10] sm:$0xff]  ;;  %vm1114_vm11 = vcmask 7168   ;;  %vm1116_vm12 = vcmask 64512   ;;  %vm1194_vm13 = vcmask 1043456   ;;  %vm1190_vm14 = vcmask 31744  }
  0x43   : > { %v827_v4 = vstv %s823_s30  ;;  %s2502_s30 = sld [smem:[#allocation17_spill]]  ;;  %vm1314_vm15 = vcmask 265224   ;;  %vm1334_vm1 = vcmask 195584   ;;  %vm1719_vm2 = vcmask 0  }
  0x44   : > { %v829_v6 = vstv %s2250_s7  ;;  %s2068_s7 = smov 1  }
  0x45   : > { %s809_s4 = scalar_lea.vmem %s2499_s27, %s1823_s3 }
  0x46   : > { %v825_v2 = vld [vmem:[%s809_s4] sm:$0x3]  ;;  %s2503_s4 = sld [smem:[#allocation18_spill]] }
  0x47   : > { %s813_s0 = scalar_lea.vmem %s2500_s5, %s1823_s3  ;;  %s818_s23 = scalar_lea.vmem %s2501_s25, %s1945_s26  ;;  %v828_v5 = vmul.f32 %v827_v4, %v825_v2  ;;  %v2281_v13 = vmul.f32 %v829_v6, %v825_v2 }
  0x48   : > { %v826_v3 = vld [vmem:[%s813_s0] sm:$0x3]  ;;  %v844_v9 = vld [vmem:[%s818_s23 + $0x8] sm:$0xff]  ;;  %v845_v10 = vld [vmem:[%s818_s23 + $0x10] sm:$0x1]  ;;  %s2070_s3 = smov 127  }
  0x49   : > { %v2277_v7 = vmul.f32 %v827_v4, %v826_v3  ;;  %v843_v8 = vld [vmem:[%s818_s23] sm:$0xff]  ;;  %v830_v12 = vmul.f32 %v829_v6, %v826_v3  ;;  %v847_v15 = vpack.c.bf16 %v845_v10, %v845_v10  ;;  %s2069_s23 = smov 126   ;;  %v922_v3 = vld [vmem:[%s2457_s10 + $0x8] sm:$0xff]  ;;  %s2505_s0 = sld [smem:[#allocation16_spill]] }
  0x4a   : > { %v846_v14 = vpack.c.bf16 %v844_v9, %v843_v8  ;;  %v1988_v19 = vld [vmem:[%s2502_s30] sm:$0xff]   ;;  %s2507_s5 = sld [smem:[#allocation20_spill]]  ;;  %s2508_s25 = sld [smem:[#allocation21_spill]] }
  0x4b   : > { %v831_v16 = vadd.f32 %v830_v12, %v828_v5  ;;  %v863_v17 = vand.u32 %v861_v11, %v847_v15  ;;  %v1990_v53 = vld [vmem:[%s2504_s29] sm:$0xff]   ;;  %s2506_s29 = sld [smem:[#allocation15_spill]] }
  0x4c   : > { %1878 = vmatpush3.bf16.msra.mxu0 %v846_v14  ;;  %v848_v26 = vld [vmem:[%s2503_s4] sm:$0xff]  ;;  %v849_v28 = vld [vmem:[%s2503_s4 + $0x8] sm:$0xff] }
  0x4d   : > { %1879 = vmatprep.subr.bf16.mxu0 %v2065_v0  ;;  %v1849_v18 = vpack.c.bf16 %v831_v16, %v831_v16  ;;  %v973_v11 = vld [vmem:[%s2458_s11] sm:$0xf] }
  0x4f   : > { %1030 = vrot.lane.b32.xlu0 %v1849_v18, %s2068_s7  ;;  %v2340_v15 = vld [vmem:[%s2505_s0] sm:$0xf] }
  0x50   : > { %1880 = vmatpush3.bf16.msra.mxu0 %v863_v17 }
  0x51   : > { %1897 = vmatprep.subr.bf16.mxu0 %v2065_v0 }
  0x53   : > { %1882 = vmatmul.mubr.msk.bf16.vlgmr.msra.gmra.mrb[0].mxu0 %vm855_vm4, %v1988_v19 }
  0x54   : > { %1899 = vmatprep.mubr.msk.bf16.mxu0 %vm2066_vm0, %v2065_v0 }
  0xc1   : > { %v1031_v20 = vpop.permute.xlu0 %1030 }
  0xc2   : > { %1034 = vst.msk [vmem:[#allocation2] sm:$0x1] %vm1033_vm5, %v1031_v20 }
  0xc9   : > { %v1035_v21 = vld [vmem:[#allocation2] sm:$0x1] }
  0xca   : > { %v1832_v22 = vcombine.low %v1035_v21, %v1035_v21 }
  0xcc   : > { %v1042_v23 = vrot.slane %v1832_v22, 6  ;;  %v1039_v24 = vrot.slane %v1832_v22, 7 }
  0xce   : > { %1043 = vrot.lane.b32.xlu1 %v1042_v23, %s2069_s23  ;;  %1040 = vrot.lane.b32.xlu0 %v1039_v24, %s2070_s3  ;;  %v1104_v24 = vld [vmem:[%s2462_s15] sm:$0xff] }
  0xd2   : > { %1054 = vperm.xlu1 %1982, %v1025_v25  }
 0x126   : > { %v899_v27 = vpop.f32.mrb[0].mxu0 }
 0x127   : > { %v900_v29 = vadd.f32 %v899_v27, %v848_v26  ;;  %v1883_v30 = vpop.f32.mrb[1].mxu0 }
 0x128   : > { %v902_v31 = vpop.f32.mrb[2].mxu0 }
 0x129   : > { %v906_v32 = vsub.f32 0.0, %v900_v29  ;;  %v903_v33 = vadd.f32 %v902_v31, %v849_v28  ;;  %v1884_v34 = vpop.f32.mrb[3].mxu0 }
 0x12b   : > { %v908_v35 = vmul.f32 1.442695, %v906_v32  ;;  %v907_v36 = vsub.f32 0.0, %v903_v33 }
 0x12d   : > { %1993 = vpow2.f32 %v908_v35  ;;  %v910_v37 = vmul.f32 1.442695, %v907_v36 }
 0x12f   : > { %1995 = vpow2.f32 %v910_v37  ;;  %v1105_v37 = vld [vmem:[%s2463_s16] sm:$0xff] }
 0x137   : > { %v1994_v38 = vpop.eup %1993 }
 0x138   : > { %v912_v39 = vadd.f32 1.0, %v1994_v38 }
 0x139   : > { %v1996_v40 = vpop.eup %1995 }
 0x13a   : > { %1997 = vrcp.f32 %v912_v39  ;;  %v913_v41 = vadd.f32 1.0, %v1996_v40 }
 0x13c   : > { %1999 = vrcp.f32 %v913_v41 }
 0x140   : > { %v1044_v42 = vpop.permute.xlu1 %1043  ;;  %v1041_v43 = vpop.permute.xlu0 %1040 }
 0x141   : > { %v1047_v44 = vsel %vm859_vm3, %v1035_v21, %v1041_v43  ;;  %v2351_v21 = vld [vmem:[%s2506_s29] sm:$0xff]  ;;  %s821_s29 = scalar_lea.vmem %s2508_s25, %s2511_s2 }
 0x142   : > { %v1050_v45 = vsel %vm1048_vm6, %v1047_v44, %v1044_v42 }
 0x143   : > { %v1062_v47 = vsel %vm1061_vm7, %v1050_v45, 0 }
 0x144   : > { %v1998_v46 = vpop.eup %1997  ;;  %1898 = vmatpush3.bf16.msra.mxu0 %v1062_v47 }
 0x145   : > { %v916_v49 = vmul.f32 %v1998_v46, %v900_v29  ;;  %1908 = vmatprep.subr.mxu0 %v2065_v0  ;;  %v2071_v29 = vmov 1  }
 0x146   : > { %v2000_v50 = vpop.eup %1999  ;;  %1983 = vset.pattern.permute.xlu1 %v2071_v29 }
 0x147   : > { %v917_v51 = vmul.f32 %v2000_v50, %v903_v33  ;;  %1900 = vmatmul.mubr.msk.bf16.vlgmr.msra.gmra.mrb[4].mxu0 %vm1057_vm8, %v1051_v48 }
 0x148   : > { %1910 = vmatprep.mubr.msk.f32.mxu0 %vm2066_vm0, %v2065_v0 }
 0x149   : > { %v920_v52 = vpack.c.bf16 %v917_v51, %v916_v49 }
 0x14b   : > { %1886 = vmatpush3.bf16.msra.mxu1 %v920_v52  ;;  %v975_v52 = vld [vmem:[%s2459_s12] sm:$0xff] }
 0x14c   : > { %1891 = vmatprep.subr.bf16.mxu1 %v2065_v0 }
 0x14e   : > { %1888 = vmatmul.mubr.msk.bf16.vlgmr.msra.gmra.mrb[0].mxu1 %vm928_vm9, %v1990_v53 }
 0x14f   : > { %1893 = vmatprep.mubr.msk.bf16.mxu1 %vm2066_vm0, %v2065_v0 }
 0x151   : > { %v1055_v54 = vpop.permute.xlu1 %1054 }
 0x21a   : > { %v1098_v55 = vpop.f32.mrb[4].mxu0 }
 0x21b   : > { %v2317_v56 = vadd.f32 %v1098_v55, %v1055_v54  ;;  %v1901_v57 = vpop.f32.mrb[5].mxu0 }
 0x21c   : > { %v1101_v58 = vpop.f32.mrb[6].mxu0 }
 0x21d   : > { %v1902_v59 = vpop.f32.mrb[7].mxu0  ;;  %v1107_v60 = vsel %vm1106_vm10, %v2317_v56, 0.0  ;;  %v1110_v61 = vmul.f32 %v2317_v56, %v2317_v56 }
 0x21e   : > { %1108 = vadd.xlane.f32.xlu0 %v1107_v60 }
 0x21f   : > { %v1111_v63 = vsel %vm1106_vm10, %v1110_v61, 0.0 }
 0x220   : > { %1112 = vadd.xlane.f32.xlu1 %v1111_v63 }
 0x221   : > { %v966_v2 = vpop.f32.mrb[0].mxu1 }
 0x222   : > { %v967_v4 = vadd.f32 %v966_v2, %v921_v62  ;;  %v1889_v5 = vpop.f32.mrb[1].mxu1  ;;  %v1306_v2 = vld [vmem:[%s2465_s18] sm:$0xff] }
 0x223   : > { %v969_v6 = vpop.f32.mrb[2].mxu1 }
 0x224   : > { %v970_v8 = vadd.f32 %v969_v6, %v922_v3  ;;  %v1890_v9 = vpop.f32.mrb[3].mxu1 }
 0x226   : > { %v974_v10 = vpack.c.bf16 %v970_v8, %v967_v4  ;;  %v1328_v8 = vld [vmem:[%s2464_s17] sm:$0xf] }
 0x228   : > { %1892 = vmatpush3.bf16.msra.mxu1 %v974_v10 }
 0x229   : > { %1903 = vmatprep.subr.mxu1 %v2065_v0 }
 0x22b   : > { %1894 = vmatmul.mubr.msk.bf16.vlgmr.msra.gmra.mrb[4].mxu1 %vm928_vm9, %v973_v11 }
 0x22c   : > { %1905 = vmatprep.mubr.msk.f32.mxu1 %vm2066_vm0, %v2065_v0 }
 0x231   : > { %1279 = vrot.lane.b32.xlu1 %v1104_v24, %s2068_s7 }
 0x2ab   : > { %v1109_v12 = vpop.xlane.xlu0 %1108 }
 0x2ad   : > { %v1113_v14 = vpop.xlane.xlu1 %1112 }
 0x2ae   : > { %v1115_v16 = vsel %vm1114_vm11, %v1109_v12, %v1113_v14 }
 0x2af   : > { %1904 = vmatpush3.msra.mxu1 %v1115_v16 }
 0x2b0   : > { %1906 = vmatmul.mubr.msk.f32.vlgmr.msra.gmra.mrb[8].mxu1 %vm1116_vm12, %v2340_v15  ;;  %1913 = vmatprep.subr.bf16.mxu1 %v2065_v0 }
 0x2b1   : > { %1917 = vmatprep.mubr.msk.bf16.mxu1 %vm2066_vm0, %v2065_v0  ;;  %v1280_v34 = vpop.permute.xlu1 %1279 }
 0x2fe   : > { %v1013_v17 = vpop.f32.mrb[4].mxu1 }
 0x2ff   : > { %v1895_v18 = vpop.f32.mrb[5].mxu1  ;;  %v1014_v53 = vadd.f32 %v1013_v17, %v975_v52 }
 0x300   : > { %v1016_v19 = vpop.f32.mrb[6].mxu1 }
 0x301   : > { %v1896_v20 = vpop.f32.mrb[7].mxu1  ;;  %v1019_v54 = vsub.f32 0.0, %v1014_v53 }
 0x303   : > { %v1020_v55 = vmul.f32 1.442695, %v1019_v54 }
 0x383   : > { %v1186_v22 = vpop.f32.mrb[8].mxu1 }
 0x384   : > { %v1907_v23 = vpop.f32.mrb[9].mxu1  ;;  %1909 = vmatpush3.msk.msra.mxu0 %vm1194_vm13, %v1186_v22 }
 0x385   : > { %1911 = vmatmul.mubr.msk.f32.vlgmr.msra.gmra.mrb[8].mxu0 %vm1190_vm14, %v2351_v21  ;;  %1921 = vmatprep.subr.mxu0 %v2065_v0 }
 0x386   : > { %1923 = vmatprep.mubr.msk.f32.mxu0 %vm2066_vm0, %v2065_v0 }
 0x458   : > { %v1264_v25 = vpop.f32.mrb[8].mxu0 }
 0x459   : > { %v1268_v26 = vmul.f32 0.015625, %v1264_v25  ;;  %v1912_v27 = vpop.f32.mrb[9].mxu0 }
 0x45b   : > { %v1269_v28 = vmul.f32 %v1268_v26, %v1268_v26 }
 0x45d   : > { %1271 = vrot.lane.b32.xlu0 %v1269_v28, %s2068_s7 }
 0x4cf   : > { %v1272_v30 = vpop.permute.xlu0 %1271 }
 0x4d0   : > { %v1274_v31 = vsub.f32 %v1268_v26, %v1272_v30 }
 0x4d2   : > { %v1275_v32 = vmax.f32 %v1274_v31, 0.0 }
 0x4d4   : > { %v1276_v33 = vadd.f32 1e-05, %v1275_v32 }
 0x4d6   : > { %2001 = vrsqrt.f32 %v1276_v33 }
 0x4e0   : > { %v2002_v35 = vpop.eup %2001 }
 0x4e1   : > { %v1282_v36 = vmul.f32 %v2002_v35, %v1280_v34 }
 0x4e3   : > { %1290 = vperm.xlu1 %1983, %v1282_v36   ;;  %1284 = vrot.lane.b32.xlu0 %v1282_v36, %s2070_s3 }
 0x4e7   : > { %1985 = vset.pattern.permute.xlu1 %v2067_v1 }
 0x555   : > { %v1285_v38 = vpop.permute.xlu0 %1284 }
 0x556   : > { %v1287_v39 = vmul.f32 %v1285_v38, %v1268_v26  ;;  %v1388_v38 = vld [vmem:[%s2467_s20] sm:$0xff] }
 0x558   : > { %v1288_v40 = vsub.f32 %v1105_v37, %v1287_v39 }
 0x55a   : > { %1296 = vperm.xlu0 %1984, %v1288_v40  }
 0x562   : > { %v1291_v41 = vpop.permute.xlu1 %1290 }
 0x563   : > { %v1293_v42 = vmul.f32 %v1291_v41, %v2317_v56 }
 0x5d9   : > { %v1297_v43 = vpop.permute.xlu0 %1296 }
 0x5da   : > { %v1299_v44 = vadd.f32 %v1297_v43, %v1293_v42 }
 0x5dc   : > { %v1300_v45 = vsub.f32 0.0, %v1299_v44 }
 0x5de   : > { %v1301_v46 = vmul.f32 1.442695, %v1300_v45 }
 0x5e0   : > { %2003 = vpow2.f32 %v1301_v46 }
 0x5ea   : > { %v2004_v47 = vpop.eup %2003 }
 0x5eb   : > { %v1303_v48 = vadd.f32 1.0, %v2004_v47 }
 0x5ed   : > { %2005 = vrcp.f32 %v1303_v48 }
 0x5ee   : > { %2007 = vpow2.f32 %v1020_v55  ;;  %v1654_v55 = vld [vmem:[%s2471_s24] sm:$0x3] }
 0x5f7   : > { %v2006_v49 = vpop.eup %2005 }
 0x5f8   : > { %v1305_v50 = vmul.f32 %v2006_v49, %v1299_v44  ;;  %v2008_v57 = vpop.eup %2007 }
 0x5f9   : > { %v1022_v58 = vadd.f32 1.0, %v2008_v57  ;;  %v1578_v57 = vld [vmem:[%s2469_s22] sm:$0xff] }
 0x5fa   : > { %v1850_v51 = vpack.c.bf16 %v1305_v50, %v1305_v50 }
 0x5fb   : > { %2009 = vrcp.f32 %v1022_v58 }
 0x5fc   : > { %1311 = vrot.lane.b32.xlu1 %v1850_v51, %s2068_s7 }
 0x605   : > { %v2010_v62 = vpop.eup %2009 }
 0x606   : > { %v1024_v63 = vmul.f32 %v2010_v62, %v1014_v53  ;;  %v1599_v62 = vld [vmem:[%s2468_s21] sm:$0xf] }
 0x66e   : > { %v1312_v59 = vpop.permute.xlu1 %1311 }
 0x66f   : > { %1315 = vst.msk [vmem:[#allocation2] sm:$0xf] %vm1314_vm15, %v1312_v59 }
 0x676   : > { %v1316_v60 = vld [vmem:[#allocation2] sm:$0xf] }
 0x677   : > { %v1838_v61 = vcombine.low %v1316_v60, %v1316_v60 }
 0x679   : > { %1322 = vrot.lane.b32.xlu0 %v1838_v61, %s2069_s23  ;;  %1320 = vrot.lane.b32.xlu1 %v1838_v61, %s2070_s3 }
 0x67d   : > { %1383 = vperm.xlu0 %1984, %v1024_v63   ;;  %1331 = vperm.xlu1 %1985, %v1306_v2   ;;  %v834_v63 = vsub.f32 %v2277_v7, %v2281_v13 }
 0x681   : > { %1986 = vset.pattern.permute.xlu0 %v2071_v29 }
 0x6eb   : > { %v1321_v3 = vpop.permute.xlu1 %1320  ;;  %v1323_v5 = vpop.permute.xlu0 %1322 }
 0x6ec   : > { %v1326_v4 = vsel %vm1194_vm13, %v1316_v60, %v1321_v3  ;;  %v1339_v6 = vsel %vm1194_vm13, %v1323_v5, 0 }
 0x6ed   : > { %1914 = vmatpush3.bf16.msra.mxu1 %v1326_v4 }
 0x6ee   : > { %1915 = vmatprep.subr.bf16.mxu1 %v2065_v0 }
 0x6f1   : > { %1916 = vmatpush3.bf16.msra.mxu1 %v1339_v6 }
 0x6f2   : > { %1931 = vmatprep.subr.bf16.mxu1 %v2065_v0 }
 0x6f4   : > { %1918 = vmatmul.mubr.msk.bf16.vlgmr.msra.gmra.mrb[12].mxu1 %vm1334_vm1, %v1328_v8 }
 0x6f5   : > { %1935 = vmatprep.mubr.msk.bf16.mxu1 %vm2066_vm0, %v2065_v0 }
 0x6fc   : > { %v1332_v9 = vpop.permute.xlu1 %1331  ;;  %v1384_v14 = vpop.permute.xlu0 %1383 }
 0x7c7   : > { %v1375_v10 = vpop.f32.mrb[12].mxu1 }
 0x7c8   : > { %v1376_v11 = vadd.f32 %v1375_v10, %v1332_v9  ;;  %v1919_v12 = vpop.f32.mrb[13].mxu1 }
 0x7c9   : > { %v1378_v16 = vpop.f32.mrb[14].mxu1 }
 0x7ca   : > { %v1386_v17 = vadd.f32 %v1384_v14, %v1376_v11  ;;  %v1920_v18 = vpop.f32.mrb[15].mxu1  ;;  %v1652_v11 = vld [vmem:[%s2507_s5] sm:$0x1] }
 0x7cc   : > { %v1389_v19 = vsel %vm1106_vm10, %v1386_v17, 0.0  ;;  %v1392_v20 = vmul.f32 %v1386_v17, %v1386_v17 }
 0x7cd   : > { %1390 = vadd.xlane.f32.xlu1 %v1389_v19 }
 0x7ce   : > { %v1393_v22 = vsel %vm1106_vm10, %v1392_v20, 0.0 }
 0x7cf   : > { %1394 = vadd.xlane.f32.xlu0 %v1393_v22 }
 0x85a   : > { %v1391_v23 = vpop.xlane.xlu1 %1390 }
 0x85c   : > { %v1395_v24 = vpop.xlane.xlu0 %1394 }
 0x85d   : > { %v1396_v25 = vsel %vm1114_vm11, %v1391_v23, %v1395_v24 }
 0x85e   : > { %1922 = vmatpush3.msra.mxu0 %v1396_v25 }
 0x85f   : > { %1924 = vmatmul.mubr.msk.f32.vlgmr.msra.gmra.mrb[10].mxu0 %vm1116_vm12, %v2340_v15  ;;  %1926 = vmatprep.subr.mxu0 %v2065_v0  ;;  %v1387_v15 = vld [vmem:[%s2466_s19] sm:$0xff] }
 0x860   : > { %1928 = vmatprep.mubr.msk.f32.mxu0 %vm2066_vm0, %v2065_v0  ;;  %1551 = vrot.lane.b32.xlu1 %v1387_v15, %s2068_s7 }
 0x8d2   : > { %v1552_v35 = vpop.permute.xlu1 %1551 }
 0x932   : > { %v1463_v26 = vpop.f32.mrb[10].mxu0 }
 0x933   : > { %1927 = vmatpush3.msk.msra.mxu0 %vm1194_vm13, %v1463_v26  ;;  %v1925_v27 = vpop.f32.mrb[11].mxu0 }
 0x934   : > { %1929 = vmatmul.mubr.msk.f32.vlgmr.msra.gmra.mrb[12].mxu0 %vm1190_vm14, %v2351_v21  ;;  %1939 = vmatprep.subr.bf16.mxu0 %v2065_v0 }
 0x935   : > { %1941 = vmatprep.mubr.msk.bf16.mxu0 %vm2066_vm0, %v2065_v0  ;;  %vm1708_vm0 = vcmask 254976  }
 0xa07   : > { %v1536_v28 = vpop.f32.mrb[12].mxu0 }
 0xa08   : > { %v1540_v29 = vmul.f32 0.015625, %v1536_v28  ;;  %v1930_v30 = vpop.f32.mrb[13].mxu0 }
 0xa0a   : > { %v1541_v31 = vmul.f32 %v1540_v29, %v1540_v29 }
 0xa0c   : > { %1543 = vrot.lane.b32.xlu0 %v1541_v31, %s2068_s7 }
 0xa7e   : > { %v1544_v32 = vpop.permute.xlu0 %1543 }
 0xa7f   : > { %v1546_v33 = vsub.f32 %v1540_v29, %v1544_v32 }
 0xa81   : > { %v1547_v21 = vmax.f32 %v1546_v33, 0.0 }
 0xa83   : > { %v1548_v34 = vadd.f32 1e-05, %v1547_v21 }
 0xa85   : > { %2011 = vrsqrt.f32 %v1548_v34 }
 0xa8f   : > { %v2012_v36 = vpop.eup %2011 }
 0xa90   : > { %v1554_v37 = vmul.f32 %v2012_v36, %v1552_v35 }
 0xa92   : > { %1562 = vperm.xlu0 %1986, %v1554_v37   ;;  %1556 = vrot.lane.b32.xlu1 %v1554_v37, %s2070_s3 }
 0xa96   : > { %1987 = vset.pattern.permute.xlu0 %v2067_v1 }
 0xb04   : > { %v1557_v39 = vpop.permute.xlu1 %1556 }
 0xb05   : > { %v1559_v40 = vmul.f32 %v1557_v39, %v1540_v29 }
 0xb07   : > { %v1560_v41 = vsub.f32 %v1388_v38, %v1559_v40 }
 0xb09   : > { %1568 = vperm.xlu1 %1985, %v1560_v41  }
 0xb11   : > { %v1563_v42 = vpop.permute.xlu0 %1562 }
 0xb12   : > { %v1565_v43 = vmul.f32 %v1563_v42, %v1386_v17 }
 0xb88   : > { %v1569_v44 = vpop.permute.xlu1 %1568 }
 0xb89   : > { %v1571_v45 = vadd.f32 %v1569_v44, %v1565_v43 }
 0xb8b   : > { %v1572_v46 = vsub.f32 0.0, %v1571_v45 }
 0xb8d   : > { %v1573_v47 = vmul.f32 1.442695, %v1572_v46 }
 0xb8f   : > { %2013 = vpow2.f32 %v1573_v47 }
 0xb99   : > { %v2014_v48 = vpop.eup %2013 }
 0xb9a   : > { %v1575_v49 = vadd.f32 1.0, %v2014_v48 }
 0xb9c   : > { %2015 = vrcp.f32 %v1575_v49 }
 0xba6   : > { %v2016_v50 = vpop.eup %2015 }
 0xba7   : > { %v1577_v1 = vmul.f32 %v2016_v50, %v1571_v45 }
 0xba9   : > { %v1851_v51 = vpack.c.bf16 %v1577_v1, %v1577_v1 }
 0xbab   : > { %1583 = vrot.lane.b32.xlu1 %v1851_v51, %s2068_s7 }
 0xc1d   : > { %v1584_v52 = vpop.permute.xlu1 %1583 }
 0xc1e   : > { %1586 = vst.msk [vmem:[#allocation2] sm:$0xf] %vm1314_vm15, %v1584_v52 }
 0xc25   : > { %v1587_v53 = vld [vmem:[#allocation2] sm:$0xf] }
 0xc26   : > { %v1844_v54 = vcombine.low %v1587_v53, %v1587_v53 }
 0xc28   : > { %1593 = vrot.lane.b32.xlu1 %v1844_v54, %s2069_s23  ;;  %1591 = vrot.lane.b32.xlu0 %v1844_v54, %s2070_s3 }
 0xc2c   : > { %1657 = vperm.xlu1 %1985, %v1654_v55   ;;  %1602 = vperm.xlu0 %1987, %v1578_v57  }
 0xc9a   : > { %v1592_v58 = vpop.permute.xlu0 %1591  ;;  %v1594_v60 = vpop.permute.xlu1 %1593 }
 0xc9b   : > { %v1597_v59 = vsel %vm1194_vm13, %v1587_v53, %v1592_v58  ;;  %v1609_v61 = vsel %vm1194_vm13, %v1594_v60, 0 }
 0xc9c   : > { %1932 = vmatpush3.bf16.msra.mxu1 %v1597_v59 }
 0xc9d   : > { %1933 = vmatprep.subr.bf16.mxu1 %v2065_v0 }
 0xca0   : > { %1934 = vmatpush3.bf16.msra.mxu1 %v1609_v61 }
 0xca3   : > { %1936 = vmatmul.mubr.msk.bf16.vlgmr.msra.gmra.mrb[16].mxu1 %vm1334_vm1, %v1599_v62 }
 0xcab   : > { %v1603_v2 = vpop.permute.xlu0 %1602  ;;  %v1658_v12 = vpop.permute.xlu1 %1657 }
 0xd76   : > { %v1645_v3 = vpop.f32.mrb[16].mxu1 }
 0xd77   : > { %v1646_v4 = vadd.f32 %v1645_v3, %v1603_v2  ;;  %v1937_v5 = vpop.f32.mrb[17].mxu1 }
 0xd78   : > { %v1648_v6 = vpop.f32.mrb[18].mxu1 }
 0xd79   : > { %v1651_v8 = vadd.f32 %v1646_v4, %v2317_v56  ;;  %v1938_v0 = vpop.f32.mrb[19].mxu1 }
 0xd7b   : > { %v1653_v9 = vpack.c.bf16 %v1651_v8, %v1651_v8 }
 0xd7d   : > { %v1664_v10 = vsel %vm1194_vm13, %v1653_v9, 0 }
 0xd7e   : > { %1940 = vmatpush3.bf16.msra.mxu0 %v1664_v10 }
 0xd81   : > { %1942 = vmatmul.mubr.msk.bf16.vlgmr.msra.gmra.mrb[16].mxu0 %vm1116_vm12, %v1652_v11 }
 0xe54   : > { %v1700_v7 = vpop.f32.mrb[16].mxu0 }
 0xe55   : > { %v1701_v13 = vadd.f32 %v1700_v7, %v1658_v12  ;;  %v1943_v14 = vpop.f32.mrb[17].mxu0 }
 0xe56   : > { %v1703_v16 = vpop.f32.mrb[18].mxu0 }
 0xe57   : > { %v1706_v17 = vsub.f32 %v1701_v13, %v834_v63  ;;  %v1944_v18 = vpop.f32.mrb[19].mxu0 }
 0xe59   : > { %v1707_v56 = vmul.f32 %v1706_v17, %v1706_v17 }
 0xe5b   : > { %v1709_v19 = vsel %vm1708_vm0, %v1707_v56, 0.0 }
 0xe5c   : > { %1710 = vadd.xlane.f32.xlu1 %v1709_v19 }
 0xee9   : > { %v1711_v20 = vpop.xlane.xlu1 %1710 }
 0xeea   : > { %v1712_v22 = vsel %vm1048_vm6, %v1711_v20, 0.0 }
 0xeeb   : > { %v1713_v23 = vrot.slane %v1712_v22, 4 }
 0xeed   : > { %v1714_v24 = vadd.f32 %v1713_v23, %v1712_v22 }
 0xeef   : > { %v1715_v25 = vrot.slane %v1714_v24, 2 }
 0xef1   : > { %v1716_v26 = vadd.f32 %v1715_v25, %v1714_v24 }
 0xef3   : > { %v1717_v27 = vrot.slane %v1716_v26, 1 }
 0xef5   : > { %v1718_v15 = vadd.f32 %v1717_v27, %v1716_v26 }
 0xef7   : > { %1720 = vst.msk [vmem:[%s821_s29] sm:$0x1] %vm1719_vm2, %v1718_v15 }
 0xef8 PF: > { %s2509_s30 = sld [smem:[#allocation9_spill]] }
 0xefe   : > { %s37_s29 = sadd.s32 1, %s2509_s30  }
 0xeff   : > { %p34_p5 = scmp.ge.s32.totalorder %s37_s29, 4  }
 0xf01   :  { %36 = sbr.rel (!%p34_p5) target bundleno = 15 (0xf), region = 165 }
 0xf08   :  { %1738 = vsyncpa [#allocation4], 1 }
 0xf09   :  { %1740 = vsyncpa [#allocation4 + $0x1], 1 }
 0xf0a   :  { %1741 = vsyncpa [#allocation6], 1 }

</bundles_post_ra>
